<compile_context>
chip_gen: v7x
topology: tpu7x:2x2x1
jax: 0.10.0
libtpu: 0.0.40
codegen_flags: <defaults>
</compile_context>

<pallas_src>
import math
from functools import reduce

import jax
import jax.numpy as jnp
from jax.experimental import pallas as pl
from jax.experimental.pallas import tpu as pltpu


def _axial_rope_kernel(pos_ref, fh_ref, fw_ref, o_ref):
    # pos_ref: (TM, 2)   fh_ref / fw_ref: (1, D_out)   o_ref: (TM, D_out)
    pos_h = pos_ref[:, 0:1]          # (TM, 1)
    pos_w = pos_ref[:, 1:2]          # (TM, 1)
    o_ref[...] = (pos_h * fh_ref[...] + pos_w * fw_ref[...]).astype(o_ref.dtype)


def make_axial_rope_freqs(dim, n_heads, dtype=jnp.float32):
    """Matches the PyTorch buffer construction: returns (n_heads, dim // 4)."""
    log_min = math.log(math.pi)
    log_max = math.log(10.0 * math.pi)
    n = n_heads * dim // 4
    freqs = jnp.exp(jnp.linspace(log_min, log_max, n + 1)[:-1]).astype(dtype)
    return freqs.reshape(dim // 4, n_heads).T          # (n_heads, dim // 4)


def _round_up(x, m):
    return (x + m - 1) // m * m


def axial_rope(pos, freqs, *, tile_m=256):
    """pos: [..., 2], freqs: [n_heads, dim//4] -> [..., n_heads, dim//2]."""
    *batch_dims, two = pos.shape
    assert two == 2
    n_heads, d4 = freqs.shape
    d_half = 2 * d4
    d_out = n_heads * d_half
    out_dtype = pos.dtype

    # Zero-padded frequency rows; row-major flatten of (n_heads, dim//2)
    # matches the final output reshape exactly.
    freqs = freqs.astype(out_dtype)
    zeros = jnp.zeros_like(freqs)
    freqs_h = jnp.concatenate([freqs, zeros], axis=-1).reshape(1, d_out)
    freqs_w = jnp.concatenate([zeros, freqs], axis=-1).reshape(1, d_out)

    # Flatten positions; shrink the tile for small inputs and pad M to a
    # sublane-aligned tile multiple so every grid block is uniform.
    M = reduce(lambda a, b: a * b, batch_dims, 1)
    pos_flat = pos.reshape(M, 2)
    tile_m = min(tile_m, _round_up(M, 8))
    m_pad = _round_up(M, tile_m)
    if m_pad != M:
        pos_flat = jnp.pad(pos_flat, ((0, m_pad - M), (0, 0)))

    itemsize = out_dtype.itemsize
    cost = pl.CostEstimate(
        flops=3 * m_pad * d_out,
        transcendentals=0,
        bytes_accessed=(pos_flat.size + 2 * d_out + m_pad * d_out) * itemsize,
    )

    out = pl.pallas_call(
        _axial_rope_kernel,
        out_shape=jax.ShapeDtypeStruct((m_pad, d_out), out_dtype),
        grid=(m_pad // tile_m,),
        in_specs=[
            pl.BlockSpec((tile_m, 2), lambda i: (i, 0)),     # pos tile
            pl.BlockSpec((1, d_out), lambda i: (0, 0)),      # freqs_h (resident)
            pl.BlockSpec((1, d_out), lambda i: (0, 0)),      # freqs_w (resident)
        ],
        out_specs=pl.BlockSpec((tile_m, d_out), lambda i: (i, 0)),
        compiler_params=pltpu.CompilerParams(
            dimension_semantics=("parallel",)),
        cost_estimate=cost,
    )(pos_flat, freqs_h, freqs_w)

    return out[:M].reshape(*batch_dims, n_heads, d_half)


def axial_rope_ref(pos, freqs):
    """Pure-JAX reference mirroring the PyTorch forward exactly."""
    freqs = freqs.astype(pos.dtype)
    theta_h = pos[..., None, 0:1] * freqs
    theta_w = pos[..., None, 1:2] * freqs
    return jnp.concatenate([theta_h, theta_w], axis=-1)


if __name__ == "__main__":
    dim, n_heads = 64, 4          # per-head dim; freqs: (4, 16); out last dim 32
    N, H, W = 2, 8, 8             # pos: (2, 8, 8, 2) axial positions

    key = jax.random.PRNGKey(0)
    pos = jax.random.uniform(key, (N, H, W, 2), jnp.float32,
                             minval=-1.0, maxval=1.0)
    freqs = make_axial_rope_freqs(dim, n_heads)

    out = axial_rope(pos, freqs)
    out = jax.block_until_ready(out)

    ref = axial_rope_ref(pos, freqs)
    assert out.shape == (N, H, W, n_heads, dim // 2)
    assert jnp.allclose(out, ref, atol=1e-6, rtol=1e-6), \
        f"max abs err {jnp.max(jnp.abs(out - ref))}"

    print("KERNEL_OK")
</pallas_src>

<mosaic_0001>
module attributes {stable_mosaic.version = 11 : i64} {
  func.func @_axial_rope_kernel(%arg0: i32, %arg1: memref<128x2xf32, #tpu.memory_space<vmem>>, %arg2: memref<1x128xf32, #tpu.memory_space<vmem>>, %arg3: memref<1x128xf32, #tpu.memory_space<vmem>>, %arg4: memref<128x128xf32, #tpu.memory_space<vmem>>) attributes {dimension_semantics = [#tpu.dimension_semantics<parallel>], iteration_bounds = array<i64: 1>, scalar_prefetch = 0 : i64, scratch_operands = 0 : i64, tpu.core_type = #tpu.core_type<tc>, window_params = [{transform_indices = @transform_0, window_bounds = array<i64: 128, 2>}, {pipeline_mode = #tpu.pipeline_mode<synchronous>, transform_indices = @transform_1, window_bounds = array<i64: 1, 128>}, {pipeline_mode = #tpu.pipeline_mode<synchronous>, transform_indices = @transform_2, window_bounds = array<i64: 1, 128>}, {transform_indices = @transform_3, window_bounds = array<i64: 128, 128>}]} {
    %c0 = arith.constant 0 : index
    %c0_0 = arith.constant 0 : index
    %0 = vector.load %arg1[%c0, %c0_0] : memref<128x2xf32, #tpu.memory_space<vmem>>, vector<128x1xf32>
    %c0_1 = arith.constant 0 : index
    %c1 = arith.constant 1 : index
    %1 = vector.load %arg1[%c0_1, %c1] : memref<128x2xf32, #tpu.memory_space<vmem>>, vector<128x1xf32>
    %c0_2 = arith.constant 0 : index
    %c0_3 = arith.constant 0 : index
    %2 = vector.load %arg2[%c0_2, %c0_3] : memref<1x128xf32, #tpu.memory_space<vmem>>, vector<1x128xf32>
    %3 = vector.broadcast %0 : vector<128x1xf32> to vector<128x128xf32>
    %4 = vector.broadcast %2 : vector<1x128xf32> to vector<128x128xf32>
    %5 = arith.mulf %3, %4 : vector<128x128xf32>
    %c0_4 = arith.constant 0 : index
    %c0_5 = arith.constant 0 : index
    %6 = vector.load %arg3[%c0_4, %c0_5] : memref<1x128xf32, #tpu.memory_space<vmem>>, vector<1x128xf32>
    %7 = vector.broadcast %1 : vector<128x1xf32> to vector<128x128xf32>
    %8 = vector.broadcast %6 : vector<1x128xf32> to vector<128x128xf32>
    %9 = arith.mulf %7, %8 : vector<128x128xf32>
    %10 = arith.addf %5, %9 : vector<128x128xf32>
    %c0_6 = arith.constant 0 : index
    %c0_7 = arith.constant 0 : index
    %11 = vector.load %arg4[%c0_6, %c0_7] : memref<128x128xf32, #tpu.memory_space<vmem>>, vector<128x128xf32>
    tpu.vector_store %arg4[%c0_6, %c0_7], %10 {strides = array<i32>} : memref<128x128xf32, #tpu.memory_space<vmem>>, vector<128x128xf32>,
    return
  }
  func.func @transform_0(%arg0: i32) -> (i32, i32) {
    %c0_i32 = arith.constant 0 : i32
    %c0_i32_0 = arith.constant 0 : i32
    return %arg0, %c0_i32 : i32, i32
  }
  func.func @transform_1(%arg0: i32) -> (i32, i32) {
    %c0_i32 = arith.constant 0 : i32
    %c0_i32_0 = arith.constant 0 : i32
    %c0_i32_1 = arith.constant 0 : i32
    return %c0_i32, %c0_i32_0 : i32, i32
  }
  func.func @transform_2(%arg0: i32) -> (i32, i32) {
    %c0_i32 = arith.constant 0 : i32
    %c0_i32_0 = arith.constant 0 : i32
    %c0_i32_1 = arith.constant 0 : i32
    return %c0_i32, %c0_i32_0 : i32, i32
  }
  func.func @transform_3(%arg0: i32) -> (i32, i32) {
    %c0_i32 = arith.constant 0 : i32
    %c0_i32_0 = arith.constant 0 : i32
    return %arg0, %c0_i32 : i32, i32
  }
}

</mosaic_0001>

<bundles_post_ra>
// kernel: tpu_custom_call.1
= control target key start
LH: loop header
LB: loop body
LE: loop exit
PB: predicated region body
PF: predicated region fallthrough
CT: control target
= control target key end

     0   :  { %v304_v2 = vmov 0   ;;  %s443_s0 = inlined_call_operand.vmem [shape: f32[128,2], index: 0, kind: input, shape index: {}]   ;;  %s444_s1 = inlined_call_operand.vmem [shape: f32[1,128], index: 1, kind: input, shape index: {}]   ;;  %s445_s2 = inlined_call_operand.vmem [shape: f32[1,128], index: 2, kind: input, shape index: {}]   ;;  %s446_s3 = inlined_call_operand.hbm [shape: f32[128,128], index: 3, kind: output, shape index: {}]  }
   0x1   :  { %v17_v0 = vld [vmem:[%s443_s0 + $0x10] sm:$0xff]  ;;  %v15_v1 = vld [vmem:[%s443_s0] sm:$0xff]  ;;  %277 = vset.pattern.permute.xlu1 %v304_v2  ;;  %276 = vset.pattern.permute.xlu0 %v304_v2  ;;  %v18_v3 = vld [vmem:[%s443_s0 + $0x18] sm:$0xff] }
   0x2   :  { %44 = vperm.xlu1 %277, %v17_v0   ;;  %34 = vperm.xlu0 %276, %v15_v1   ;;  %v16_v4 = vld [vmem:[%s443_s0 + $0x8] sm:$0xff] }
   0x3   :  { %8 = vsyncpa [#allocation3], 0  ;;  %v20_v5 = vld [vmem:[%s443_s0 + $0x28] sm:$0xff]  ;;  %v19_v6 = vld [vmem:[%s443_s0 + $0x20] sm:$0xff]  ;;  %v305_v17 = vmov 1  }
   0x4   :  { %v22_v7 = vld [vmem:[%s443_s0 + $0x38] sm:$0xff]  ;;  %v21_v8 = vld [vmem:[%s443_s0 + $0x30] sm:$0xff]  ;;  %v24_v9 = vld [vmem:[%s443_s0 + $0x48] sm:$0xff] }
   0x5   :  { %v23_v10 = vld [vmem:[%s443_s0 + $0x40] sm:$0xff]  ;;  %v26_v11 = vld [vmem:[%s443_s0 + $0x58] sm:$0xff]  ;;  %v25_v12 = vld [vmem:[%s443_s0 + $0x50] sm:$0xff] }
   0x6   :  { %49 = vperm.xlu1 %277, %v18_v3   ;;  %39 = vperm.xlu0 %276, %v16_v4   ;;  %v28_v13 = vld [vmem:[%s443_s0 + $0x68] sm:$0xff]  ;;  %v27_v14 = vld [vmem:[%s443_s0 + $0x60] sm:$0xff]  ;;  %v30_v15 = vld [vmem:[%s443_s0 + $0x78] sm:$0xff] }
   0x7   :  { %v29_v16 = vld [vmem:[%s443_s0 + $0x70] sm:$0xff]  ;;  %v388_v34 = vld [vmem:[%s444_s1] ss:$0 sm:$0xff]  ;;  %s306_s1 = smov [#allocation2]  }
   0x8   :  { %v393_v35 = vld [vmem:[%s445_s2] ss:$0 sm:$0xff]  ;;  %s258_s2 = sshll.u32 %s306_s1, 4  ;;  %s259_s2 = int_to_ptr.vmem [resolvable:$true] %s258_s2 }
   0x9   :  { %s280_s20 = scalar_lea.vmem %s259_s2, 2048  ;;  %p285_p1 = scmp.lt.s32.totalorder %s259_s2, %s259_s2 }
   0xa   :  { %59 = vperm.xlu1 %277, %v20_v5   ;;  %54 = vperm.xlu0 %276, %v19_v6   ;;  %p281_p0 = scmp.ne.s32.totalorder %s259_s2, %s280_s20  ;;  %p286_p2 = scmp.lt.s32.totalorder %s280_s20, %s280_s20 }
   0xc   :  { %p287_p3 = por %p286_p2, %p285_p1 }
   0xe   :  { %69 = vperm.xlu1 %277, %v22_v7   ;;  %64 = vperm.xlu0 %276, %v21_v8   ;;  %p288_p4 = pnand %p287_p3, %p281_p0 }
  0x12   :  { %79 = vperm.xlu1 %277, %v24_v9   ;;  %74 = vperm.xlu0 %276, %v23_v10  }
  0x16   :  { %89 = vperm.xlu1 %277, %v26_v11   ;;  %84 = vperm.xlu0 %276, %v25_v12  }
  0x1a   :  { %99 = vperm.xlu1 %277, %v28_v13   ;;  %94 = vperm.xlu0 %276, %v27_v14  }
  0x1e   :  { %109 = vperm.xlu1 %277, %v30_v15   ;;  %104 = vperm.xlu0 %276, %v29_v16  }
  0x22   :  { %279 = vset.pattern.permute.xlu1 %v305_v17  ;;  %278 = vset.pattern.permute.xlu0 %v305_v17 }
  0x23   :  { %140 = vperm.xlu1 %279, %v16_v4   ;;  %136 = vperm.xlu0 %278, %v15_v1  }
  0x27   :  { %144 = vperm.xlu1 %279, %v17_v0   ;;  %148 = vperm.xlu0 %278, %v18_v3  }
  0x2b   :  { %152 = vperm.xlu1 %279, %v19_v6   ;;  %156 = vperm.xlu0 %278, %v20_v5  }
  0x2f   :  { %160 = vperm.xlu1 %279, %v21_v8   ;;  %164 = vperm.xlu0 %278, %v22_v7  }
  0x33   :  { %168 = vperm.xlu1 %279, %v23_v10   ;;  %172 = vperm.xlu0 %278, %v24_v9  }
  0x37   :  { %176 = vperm.xlu1 %279, %v25_v12   ;;  %180 = vperm.xlu0 %278, %v26_v11  }
  0x3b   :  { %184 = vperm.xlu1 %279, %v27_v14   ;;  %188 = vperm.xlu0 %278, %v28_v13  }
  0x3f   :  { %192 = vperm.xlu1 %279, %v29_v16   ;;  %196 = vperm.xlu0 %278, %v30_v15  }
  0x81   :  { %v45_v18 = vpop.permute.xlu1 %44  ;;  %v35_v19 = vpop.permute.xlu0 %34 }
  0x82   :  { %v118_v38 = vmul.f32 %v388_v34, %v35_v19  ;;  %v120_v46 = vmul.f32 %v388_v34, %v45_v18 }
  0x85   :  { %v50_v20 = vpop.permute.xlu1 %49  ;;  %v40_v21 = vpop.permute.xlu0 %39 }
  0x86   :  { %v119_v39 = vmul.f32 %v388_v34, %v40_v21  ;;  %v121_v47 = vmul.f32 %v388_v34, %v50_v20 }
  0x89   :  { %v60_v22 = vpop.permute.xlu1 %59  ;;  %v55_v23 = vpop.permute.xlu0 %54 }
  0x8a   :  { %v123_v54 = vmul.f32 %v388_v34, %v60_v22  ;;  %v122_v55 = vmul.f32 %v388_v34, %v55_v23 }
  0x8d   :  { %v70_v24 = vpop.permute.xlu1 %69  ;;  %v65_v25 = vpop.permute.xlu0 %64 }
  0x8e   :  { %v125_v62 = vmul.f32 %v388_v34, %v70_v24  ;;  %v124_v63 = vmul.f32 %v388_v34, %v65_v25 }
  0x91   :  { %v80_v26 = vpop.permute.xlu1 %79  ;;  %v75_v27 = vpop.permute.xlu0 %74 }
  0x92   :  { %v127_v6 = vmul.f32 %v388_v34, %v80_v26  ;;  %v126_v7 = vmul.f32 %v388_v34, %v75_v27 }
  0x95   :  { %v90_v28 = vpop.permute.xlu1 %89  ;;  %v85_v29 = vpop.permute.xlu0 %84 }
  0x96   :  { %v129_v14 = vmul.f32 %v388_v34, %v90_v28  ;;  %v128_v15 = vmul.f32 %v388_v34, %v85_v29 }
  0x99   :  { %v377_v30 = vpop.permute.xlu1 %99  ;;  %v379_v31 = vpop.permute.xlu0 %94 }
  0x9a   :  { %v131_v22 = vmul.f32 %v388_v34, %v377_v30  ;;  %v130_v23 = vmul.f32 %v388_v34, %v379_v31 }
  0x9d   :  { %v381_v32 = vpop.permute.xlu1 %109  ;;  %v383_v33 = vpop.permute.xlu0 %104 }
  0x9e   :  { %v132_v30 = vmul.f32 %v388_v34, %v383_v33 }
  0xa2   :  { %v141_v36 = vpop.permute.xlu1 %140  ;;  %v137_v37 = vpop.permute.xlu0 %136 }
  0xa3   :  { %v206_v40 = vmul.f32 %v393_v35, %v141_v36  ;;  %v205_v41 = vmul.f32 %v393_v35, %v137_v37  ;;  %v133_v36 = vmul.f32 %v388_v34, %v381_v32 }
  0xa5   :  { %v222_v42 = vadd.f32 %v206_v40, %v119_v39  ;;  %v221_v43 = vadd.f32 %v205_v41, %v118_v38 }
  0xa6   :  { %v145_v44 = vpop.permute.xlu1 %144  ;;  %v149_v45 = vpop.permute.xlu0 %148 }
  0xa7   :  { %238 = vst [vmem:[#allocation2 + $0x8] sm:$0xff] %v222_v42  ;;  %237 = vst [vmem:[#allocation2] sm:$0xff] %v221_v43  ;;  %v207_v48 = vmul.f32 %v393_v35, %v145_v44  ;;  %v208_v49 = vmul.f32 %v393_v35, %v149_v45 }
  0xa9   :  { %v223_v50 = vadd.f32 %v207_v48, %v120_v46  ;;  %v224_v51 = vadd.f32 %v208_v49, %v121_v47 }
  0xaa   :  { %v153_v52 = vpop.permute.xlu1 %152  ;;  %v157_v53 = vpop.permute.xlu0 %156 }
  0xab   :  { %239 = vst [vmem:[#allocation2 + $0x10] sm:$0xff] %v223_v50  ;;  %240 = vst [vmem:[#allocation2 + $0x18] sm:$0xff] %v224_v51  ;;  %v209_v56 = vmul.f32 %v393_v35, %v153_v52  ;;  %v210_v57 = vmul.f32 %v393_v35, %v157_v53 }
  0xad   :  { %v225_v58 = vadd.f32 %v209_v56, %v122_v55  ;;  %v226_v59 = vadd.f32 %v210_v57, %v123_v54 }
  0xae   :  { %v161_v60 = vpop.permute.xlu1 %160  ;;  %v165_v61 = vpop.permute.xlu0 %164 }
  0xaf   :  { %241 = vst [vmem:[#allocation2 + $0x20] sm:$0xff] %v225_v58  ;;  %242 = vst [vmem:[#allocation2 + $0x28] sm:$0xff] %v226_v59  ;;  %v211_v0 = vmul.f32 %v393_v35, %v161_v60  ;;  %v212_v1 = vmul.f32 %v393_v35, %v165_v61 }
  0xb1   :  { %v227_v2 = vadd.f32 %v211_v0, %v124_v63  ;;  %v228_v3 = vadd.f32 %v212_v1, %v125_v62 }
  0xb2   :  { %v169_v4 = vpop.permute.xlu1 %168  ;;  %v173_v5 = vpop.permute.xlu0 %172 }
  0xb3   :  { %243 = vst [vmem:[#allocation2 + $0x30] sm:$0xff] %v227_v2  ;;  %244 = vst [vmem:[#allocation2 + $0x38] sm:$0xff] %v228_v3  ;;  %v213_v8 = vmul.f32 %v393_v35, %v169_v4  ;;  %v214_v9 = vmul.f32 %v393_v35, %v173_v5 }
  0xb5   :  { %v229_v10 = vadd.f32 %v213_v8, %v126_v7  ;;  %v230_v11 = vadd.f32 %v214_v9, %v127_v6 }
  0xb6   :  { %v177_v12 = vpop.permute.xlu1 %176  ;;  %v181_v13 = vpop.permute.xlu0 %180 }
  0xb7   :  { %245 = vst [vmem:[#allocation2 + $0x40] sm:$0xff] %v229_v10  ;;  %246 = vst [vmem:[#allocation2 + $0x48] sm:$0xff] %v230_v11  ;;  %v215_v16 = vmul.f32 %v393_v35, %v177_v12  ;;  %v216_v17 = vmul.f32 %v393_v35, %v181_v13 }
  0xb9   :  { %v231_v18 = vadd.f32 %v215_v16, %v128_v15  ;;  %v232_v19 = vadd.f32 %v216_v17, %v129_v14 }
  0xba   :  { %v185_v20 = vpop.permute.xlu1 %184  ;;  %v189_v21 = vpop.permute.xlu0 %188 }
  0xbb   :  { %247 = vst [vmem:[#allocation2 + $0x50] sm:$0xff] %v231_v18  ;;  %248 = vst [vmem:[#allocation2 + $0x58] sm:$0xff] %v232_v19  ;;  %v217_v24 = vmul.f32 %v393_v35, %v185_v20  ;;  %v218_v25 = vmul.f32 %v393_v35, %v189_v21 }
  0xbd   :  { %v233_v26 = vadd.f32 %v217_v24, %v130_v23  ;;  %v234_v27 = vadd.f32 %v218_v25, %v131_v22 }
  0xbe   :  { %v193_v28 = vpop.permute.xlu1 %192  ;;  %v197_v29 = vpop.permute.xlu0 %196 }
  0xbf   :  { %249 = vst [vmem:[#allocation2 + $0x60] sm:$0xff] %v233_v26  ;;  %250 = vst [vmem:[#allocation2 + $0x68] sm:$0xff] %v234_v27  ;;  %v219_v31 = vmul.f32 %v393_v35, %v193_v28  ;;  %v220_v37 = vmul.f32 %v393_v35, %v197_v29 }
  0xc1   :  { %v235_v38 = vadd.f32 %v219_v31, %v132_v30  ;;  %v236_v39 = vadd.f32 %v220_v37, %v133_v36 }
  0xc3   :  { %251 = vst [vmem:[#allocation2 + $0x70] sm:$0xff] %v235_v38  ;;  %252 = vst [vmem:[#allocation2 + $0x78] sm:$0xff] %v236_v39 }
  0xc4   :  { %291 = shalt.err (!%p288_p4)
}
  0xc5   :  { %s292_s23 = scalar_lea.hbm %s446_s3, 2048 }
  0xc6   :  { %p293_p5 = scmp.ne.s32.totalorder %s446_s3, %s292_s23  ;;  %p296_p6 = scmp.lt.u32.totalorder %s292_s23, %s446_s3 }
  0xc8   :  { %p298_p7 = pnand %p296_p6, %p293_p5 }
  0xca   :  { %301 = shalt.err (!%p298_p7)
}
  0xcb   :  { %s307_s28 = smov 128   ;;  %s308_s29 = smov 8  }
  0xcc   :  { %264 = dma.vmem_to_hbm [thread:$0]  %s259_s2, 2048, %s446_s3, [#allocation3], %s307_s28, %s307_s28, %s308_s29  }
  0xcd   :  { %302 = dma.done.wait [#allocation3], 2048  }
  0xce   :  { %303 = vsyncadd [#allocation3], 4294965248 }
  0xcf   :  { %268 = vsyncpa [#allocation3], 1 }

</bundles_post_ra>
